<compile_context>
chip_gen: v7x
topology: tpu7x:2x2x1
jax: 0.10.0
libtpu: 0.0.40
codegen_flags: <defaults>
</compile_context>

<pallas_src>
import functools

import jax
import jax.numpy as jnp
from jax.experimental import pallas as pl
from jax.experimental.pallas import tpu as pltpu

LANE = 128


def _round_up(x, m):
    return (x + m - 1) // m * m


# ----------------------------- fused kernel -----------------------------------

def fused_multimodal_kernel(len_ref, emb_ref, audio_ref, bt_ref,
                            wa_ref, ba_ref, wct_ref, wca_ref, bc_ref, o_ref):
    """Text pool + audio linear + (ReLU -> split classifier dots) in one kernel.

    len_ref:   (TB, 1)        int32   sequence lengths
    emb_ref:   (TB, T, D_T)   f32     token embeddings pre-projected into text space
    audio_ref: (TB, F_A)      f32
    bt_ref:    (1, D_T)       f32     text bias (added after pooling)
    wa_ref:    (F_A, D_A)     f32
    ba_ref:    (1, D_A)       f32
    wct_ref:   (D_T, L_PAD)   f32     classifier weight, text rows (lane-padded)
    wca_ref:   (D_A, L_PAD)   f32     classifier weight, audio rows (lane-padded)
    bc_ref:    (1, L_PAD)     f32     classifier bias (lane-padded)
    o_ref:     (TB, L_PAD)    f32     lane-dense output block
    """
    tb, seq_len, _ = emb_ref.shape

    # Length mask built in-kernel (VPU filler; nothing materialized in HBM).
    lengths = len_ref[...]                                             # (TB, 1) int32
    pos = jax.lax.broadcasted_iota(jnp.int32, (tb, seq_len), 1)        # (TB, T)
    mask = (pos < lengths).astype(jnp.float32)                         # (TB, T)
    denom = jnp.maximum(jnp.sum(mask, axis=1, keepdims=True), 1.0)     # (TB, 1)

    # Text branch: masked mean pool directly in projected space (text Linear already
    # folded into the embedding table), then add the text bias.
    pooled = jnp.sum(emb_ref[...] * mask[:, :, None], axis=1) / denom  # (TB, D_T)
    t_feat = pooled + bt_ref[...]                                      # (TB, D_T)

    # Audio branch: one small MXU matmul.
    a_feat = (jnp.dot(audio_ref[...], wa_ref[...],
                      preferred_element_type=jnp.float32) + ba_ref[...])  # (TB, D_A)

    # Fusion head: ReLU -> dropout(eval: identity) -> Linear.
    # relu(cat(t, a)) @ [[Wt],[Wa]] == relu(t) @ Wt + relu(a) @ Wa, so no lane-axis
    # concatenate is needed.
    # TODO(synk): dropout is identity (eval mode); training parity would need
    # pltpu.prng_seed / prng_random_bits masking.
    t_act = jnp.maximum(t_feat, 0.0)                                   # (TB, D_T)
    a_act = jnp.maximum(a_feat, 0.0)                                   # (TB, D_A)
    out = jnp.dot(t_act, wct_ref[...], preferred_element_type=jnp.float32)
    out = out + jnp.dot(a_act, wca_ref[...], preferred_element_type=jnp.float32)
    o_ref[...] = out + bc_ref[...]


# ----------------------------- wrappers ---------------------------------------

def prepare_params(params, num_labels):
    """One-time parameter packing (fold text Linear, lane-pad the classifier)."""
    l_pad = _round_up(num_labels, LANE)

    # Pool-then-project == project-then-pool (pooling is linear over tokens), so fold
    # the text Linear into the embedding table once.
    emb_table_proj = jnp.dot(params["embedding"], params["w_text"])       # (VOCAB, D_T)

    # Lane-pad the classifier weights / bias to a dense 128-wide output slab.
    pad = ((0, 0), (0, l_pad - num_labels))
    w_cls_text = jnp.pad(params["w_cls_text"], pad)                       # (D_T, L_PAD)
    w_cls_audio = jnp.pad(params["w_cls_audio"], pad)                     # (D_A, L_PAD)
    b_cls = jnp.pad(params["b_cls"], pad)                                 # (1, L_PAD)

    return {
        "emb_table_proj": emb_table_proj,
        "b_text": params["b_text"],
        "w_audio": params["w_audio"],
        "b_audio": params["b_audio"],
        "w_cls_text": w_cls_text,
        "w_cls_audio": w_cls_audio,
        "b_cls": b_cls,
    }


def multimodal_forward(prepped, text_tokens, lengths, audio, num_labels):
    """Embedding gather as plain-JAX glue; everything else in one fused Pallas kernel."""
    B, T = text_tokens.shape
    emb_proj = jnp.take(prepped["emb_table_proj"], text_tokens, axis=0)   # (B, T, D_T)
    len2d = lengths.astype(jnp.int32)[:, None]                            # (B, 1)

    d_t = prepped["b_text"].shape[1]
    d_a = prepped["b_audio"].shape[1]
    f_a = audio.shape[1]
    l_pad = prepped["b_cls"].shape[1]

    # Whole (tiny) batch in one program; the grid over B shards across TensorCores
    # (megacore) once B grows — then pick TB as a multiple of 8 that fits VMEM
    # (budget against v7x's 64 MiB, not v5e/v6e's 128 MiB).
    TB = B
    grid = (pl.cdiv(B, TB),)

    out_padded = pl.pallas_call(
        fused_multimodal_kernel,
        out_shape=jax.ShapeDtypeStruct((B, l_pad), jnp.float32),
        grid=grid,
        in_specs=[
            pl.BlockSpec((TB, 1), lambda i: (i, 0)),             # lengths
            pl.BlockSpec((TB, T, d_t), lambda i: (i, 0, 0)),     # projected embeddings
            pl.BlockSpec((TB, f_a), lambda i: (i, 0)),           # audio features
            pl.BlockSpec((1, d_t), lambda i: (0, 0)),            # b_text
            pl.BlockSpec((f_a, d_a), lambda i: (0, 0)),          # w_audio
            pl.BlockSpec((1, d_a), lambda i: (0, 0)),            # b_audio
            pl.BlockSpec((d_t, l_pad), lambda i: (0, 0)),        # classifier W (text rows)
            pl.BlockSpec((d_a, l_pad), lambda i: (0, 0)),        # classifier W (audio rows)
            pl.BlockSpec((1, l_pad), lambda i: (0, 0)),          # classifier bias
        ],
        out_specs=pl.BlockSpec((TB, l_pad), lambda i: (i, 0)),
        compiler_params=pltpu.CompilerParams(
            dimension_semantics=("parallel",)),
    )(len2d, emb_proj, audio, prepped["b_text"], prepped["w_audio"],
      prepped["b_audio"], prepped["w_cls_text"], prepped["w_cls_audio"],
      prepped["b_cls"])

    # Lane-dense kernel output; drop the padded label columns here.
    return out_padded[:, :num_labels]


def reference_forward(params, text_tokens, lengths, audio, num_labels):
    """Pure-JAX reference of the same forward pass (for correctness checking)."""
    emb = jnp.take(params["embedding"], text_tokens, axis=0)             # (B, T, E)
    T = text_tokens.shape[1]
    mask = (jnp.arange(T)[None, :] < lengths[:, None]).astype(jnp.float32)
    denom = jnp.maximum(mask.sum(axis=1, keepdims=True), 1.0)
    pooled = (emb * mask[:, :, None]).sum(axis=1) / denom               # (B, E)
    t_feat = pooled @ params["w_text"] + params["b_text"]               # (B, D_T)
    a_feat = audio @ params["w_audio"] + params["b_audio"]              # (B, D_A)
    merged = jnp.maximum(jnp.concatenate([t_feat, a_feat], axis=-1), 0.0)
    w_cls = jnp.concatenate([params["w_cls_text"], params["w_cls_audio"]], axis=0)
    return merged @ w_cls + params["b_cls"]                             # (B, num_labels)


# ----------------------------- main -------------------------------------------

if __name__ == "__main__":
    # Small, deterministic shapes consistent with the module.
    B = 2            # batch
    T = 8            # text sequence length
    VOCAB = 100
    E = 32           # embedding dim
    D_T = 32         # text_model.out_dim
    F_A = 24         # audio feature dim
    D_A = 16         # audio_model.out_dim
    NUM_LABELS = 52  # default in MultiModalModel.__init__

    key = jax.random.PRNGKey(0)
    keys = jax.random.split(key, 10)

    params = {
        "embedding":   0.02 * jax.random.normal(keys[0], (VOCAB, E), jnp.float32),
        "w_text":      0.05 * jax.random.normal(keys[1], (E, D_T), jnp.float32),
        "b_text":      0.01 * jax.random.normal(keys[2], (1, D_T), jnp.float32),
        "w_audio":     0.05 * jax.random.normal(keys[3], (F_A, D_A), jnp.float32),
        "b_audio":     0.01 * jax.random.normal(keys[4], (1, D_A), jnp.float32),
        # classifier weight of shape (D_T + D_A, NUM_LABELS), stored split row-wise
        "w_cls_text":  0.05 * jax.random.normal(keys[5], (D_T, NUM_LABELS), jnp.float32),
        "w_cls_audio": 0.05 * jax.random.normal(keys[6], (D_A, NUM_LABELS), jnp.float32),
        "b_cls":       0.01 * jax.random.normal(keys[7], (1, NUM_LABELS), jnp.float32),
    }

    text_tokens = jax.random.randint(keys[8], (B, T), 0, VOCAB, dtype=jnp.int32)
    lengths = jnp.array([T, T - 3], dtype=jnp.int32)
    audio = jax.random.normal(keys[9], (B, F_A), jnp.float32)

    prepped = jax.tree_util.tree_map(jnp.asarray, prepare_params(params, NUM_LABELS))

    fwd = jax.jit(functools.partial(multimodal_forward, num_labels=NUM_LABELS))
    out = fwd(prepped, text_tokens, lengths, audio)
    out = jax.block_until_ready(out)

    assert out.shape == (B, NUM_LABELS), out.shape
    assert out.dtype == jnp.float32

    # Correctness check against a pure-JAX reference of the same forward pass.
    ref = reference_forward(params, text_tokens, lengths, audio, NUM_LABELS)
    assert jnp.allclose(out, ref, atol=1e-5, rtol=1e-5), float(jnp.abs(out - ref).max())

    print("KERNEL_OK")
</pallas_src>

<mosaic_0001>
module attributes {stable_mosaic.version = 11 : i64} {
  func.func @fused_multimodal_kernel(%arg0: i32, %arg1: memref<2x1xi32, #tpu.memory_space<vmem>>, %arg2: memref<2x8x32xf32, #tpu.memory_space<vmem>>, %arg3: memref<2x24xf32, #tpu.memory_space<vmem>>, %arg4: memref<1x32xf32, #tpu.memory_space<vmem>>, %arg5: memref<24x16xf32, #tpu.memory_space<vmem>>, %arg6: memref<1x16xf32, #tpu.memory_space<vmem>>, %arg7: memref<32x128xf32, #tpu.memory_space<vmem>>, %arg8: memref<16x128xf32, #tpu.memory_space<vmem>>, %arg9: memref<1x128xf32, #tpu.memory_space<vmem>>, %arg10: memref<2x128xf32, #tpu.memory_space<vmem>>) attributes {dimension_semantics = [#tpu.dimension_semantics<parallel>], iteration_bounds = array<i64: 1>, scalar_prefetch = 0 : i64, scratch_operands = 0 : i64, tpu.core_type = #tpu.core_type<tc>, window_params = [{transform_indices = @transform_0, window_bounds = array<i64: 2, 1>}, {transform_indices = @transform_1, window_bounds = array<i64: 2, 8, 32>}, {transform_indices = @transform_2, window_bounds = array<i64: 2, 24>}, {pipeline_mode = #tpu.pipeline_mode<synchronous>, transform_indices = @transform_3, window_bounds = array<i64: 1, 32>}, {pipeline_mode = #tpu.pipeline_mode<synchronous>, transform_indices = @transform_4, window_bounds = array<i64: 24, 16>}, {pipeline_mode = #tpu.pipeline_mode<synchronous>, transform_indices = @transform_5, window_bounds = array<i64: 1, 16>}, {pipeline_mode = #tpu.pipeline_mode<synchronous>, transform_indices = @transform_6, window_bounds = array<i64: 32, 128>}, {pipeline_mode = #tpu.pipeline_mode<synchronous>, transform_indices = @transform_7, window_bounds = array<i64: 16, 128>}, {pipeline_mode = #tpu.pipeline_mode<synchronous>, transform_indices = @transform_8, window_bounds = array<i64: 1, 128>}, {transform_indices = @transform_9, window_bounds = array<i64: 2, 128>}]} {
    %c0 = arith.constant 0 : index
    %c0_0 = arith.constant 0 : index
    %0 = vector.load %arg1[%c0, %c0_0] : memref<2x1xi32, #tpu.memory_space<vmem>>, vector<2x1xi32>
    %1 = tpu.iota {dimensions = array<i32: 1>} : vector<2x8xi32>
    %2 = vector.broadcast %0 : vector<2x1xi32> to vector<2x8xi32>
    %3 = arith.cmpi slt, %1, %2 : vector<2x8xi32>
    %4 = arith.extui %3 : vector<2x8xi1> to vector<2x8xi32>
    %5 = arith.sitofp %4 : vector<2x8xi32> to vector<2x8xf32>
    %cst = arith.constant dense<0.000000e+00> : vector<2xf32>
    %6 = vector.multi_reduction <add>, %5, %cst [1] : vector<2x8xf32> to vector<2xf32>
    %7 = vector.shape_cast %6 : vector<2xf32> to vector<2x1xf32>
    %cst_1 = arith.constant 1.000000e+00 : f32
    %8 = vector.broadcast %cst_1 : f32 to vector<2x1xf32>
    %9 = arith.maximumf %7, %8 : vector<2x1xf32>
    %c0_2 = arith.constant 0 : index
    %c0_3 = arith.constant 0 : index
    %c0_4 = arith.constant 0 : index
    %10 = vector.load %arg2[%c0_2, %c0_3, %c0_4] : memref<2x8x32xf32, #tpu.memory_space<vmem>>, vector<2x8x32xf32>
    %11 = vector.shape_cast %5 : vector<2x8xf32> to vector<2x8x1xf32>
    %12 = vector.broadcast %11 : vector<2x8x1xf32> to vector<2x8x32xf32>
    %13 = arith.mulf %10, %12 : vector<2x8x32xf32>
    %cst_5 = arith.constant dense<0.000000e+00> : vector<2x32xf32>
    %14 = vector.multi_reduction <add>, %13, %cst_5 [1] : vector<2x8x32xf32> to vector<2x32xf32>
    %15 = vector.broadcast %9 : vector<2x1xf32> to vector<2x32xf32>
    %16 = arith.divf %14, %15 : vector<2x32xf32>
    %c0_6 = arith.constant 0 : index
    %c0_7 = arith.constant 0 : index
    %17 = vector.load %arg4[%c0_6, %c0_7] : memref<1x32xf32, #tpu.memory_space<vmem>>, vector<1x32xf32>
    %18 = vector.broadcast %17 : vector<1x32xf32> to vector<2x32xf32>
    %19 = arith.addf %16, %18 : vector<2x32xf32>
    %c0_8 = arith.constant 0 : index
    %c0_9 = arith.constant 0 : index
    %20 = vector.load %arg3[%c0_8, %c0_9] : memref<2x24xf32, #tpu.memory_space<vmem>>, vector<2x24xf32>
    %c0_10 = arith.constant 0 : index
    %c0_11 = arith.constant 0 : index
    %21 = vector.load %arg5[%c0_10, %c0_11] : memref<24x16xf32, #tpu.memory_space<vmem>>, vector<24x16xf32>
    %cst_12 = arith.constant dense<0.000000e+00> : vector<2x16xf32>
    %22 = tpu.matmul %20, %21, %cst_12 {dimension_numbers = #tpu.dot_dimension_numbers<[1], [0], [0], [1], [0, 0, 1, 1], [], []>} : vector<2x24xf32>, vector<24x16xf32>, vector<2x16xf32> -> vector<2x16xf32>
    %c0_13 = arith.constant 0 : index
    %c0_14 = arith.constant 0 : index
    %23 = vector.load %arg6[%c0_13, %c0_14] : memref<1x16xf32, #tpu.memory_space<vmem>>, vector<1x16xf32>
    %24 = vector.broadcast %23 : vector<1x16xf32> to vector<2x16xf32>
    %25 = arith.addf %22, %24 : vector<2x16xf32>
    %cst_15 = arith.constant 0.000000e+00 : f32
    %26 = vector.broadcast %cst_15 : f32 to vector<2x32xf32>
    %27 = arith.maximumf %19, %26 : vector<2x32xf32>
    %cst_16 = arith.constant 0.000000e+00 : f32
    %28 = vector.broadcast %cst_16 : f32 to vector<2x16xf32>
    %29 = arith.maximumf %25, %28 : vector<2x16xf32>
    %c0_17 = arith.constant 0 : index
    %c0_18 = arith.constant 0 : index
    %30 = vector.load %arg7[%c0_17, %c0_18] : memref<32x128xf32, #tpu.memory_space<vmem>>, vector<32x128xf32>
    %cst_19 = arith.constant dense<0.000000e+00> : vector<2x128xf32>
    %31 = tpu.matmul %27, %30, %cst_19 {dimension_numbers = #tpu.dot_dimension_numbers<[1], [0], [0], [1], [0, 0, 1, 1], [], []>} : vector<2x32xf32>, vector<32x128xf32>, vector<2x128xf32> -> vector<2x128xf32>
    %c0_20 = arith.constant 0 : index
    %c0_21 = arith.constant 0 : index
    %32 = vector.load %arg8[%c0_20, %c0_21] : memref<16x128xf32, #tpu.memory_space<vmem>>, vector<16x128xf32>
    %cst_22 = arith.constant dense<0.000000e+00> : vector<2x128xf32>
    %33 = tpu.matmul %29, %32, %cst_22 {dimension_numbers = #tpu.dot_dimension_numbers<[1], [0], [0], [1], [0, 0, 1, 1], [], []>} : vector<2x16xf32>, vector<16x128xf32>, vector<2x128xf32> -> vector<2x128xf32>
    %34 = arith.addf %31, %33 : vector<2x128xf32>
    %c0_23 = arith.constant 0 : index
    %c0_24 = arith.constant 0 : index
    %35 = vector.load %arg9[%c0_23, %c0_24] : memref<1x128xf32, #tpu.memory_space<vmem>>, vector<1x128xf32>
    %36 = vector.broadcast %35 : vector<1x128xf32> to vector<2x128xf32>
    %37 = arith.addf %34, %36 : vector<2x128xf32>
    %c0_25 = arith.constant 0 : index
    %c0_26 = arith.constant 0 : index
    %38 = vector.load %arg10[%c0_25, %c0_26] : memref<2x128xf32, #tpu.memory_space<vmem>>, vector<2x128xf32>
    tpu.vector_store %arg10[%c0_25, %c0_26], %37 {strides = array<i32>} : memref<2x128xf32, #tpu.memory_space<vmem>>, vector<2x128xf32>,
    return
  }
  func.func @transform_0(%arg0: i32) -> (i32, i32) {
    %c0_i32 = arith.constant 0 : i32
    %c0_i32_0 = arith.constant 0 : i32
    return %arg0, %c0_i32 : i32, i32
  }
  func.func @transform_1(%arg0: i32) -> (i32, i32, i32) {
    %c0_i32 = arith.constant 0 : i32
    %c0_i32_0 = arith.constant 0 : i32
    %c0_i32_1 = arith.constant 0 : i32
    return %arg0, %c0_i32, %c0_i32_0 : i32, i32, i32
  }
  func.func @transform_2(%arg0: i32) -> (i32, i32) {
    %c0_i32 = arith.constant 0 : i32
    %c0_i32_0 = arith.constant 0 : i32
    return %arg0, %c0_i32 : i32, i32
  }
  func.func @transform_3(%arg0: i32) -> (i32, i32) {
    %c0_i32 = arith.constant 0 : i32
    %c0_i32_0 = arith.constant 0 : i32
    %c0_i32_1 = arith.constant 0 : i32
    return %c0_i32, %c0_i32_0 : i32, i32
  }
  func.func @transform_4(%arg0: i32) -> (i32, i32) {
    %c0_i32 = arith.constant 0 : i32
    %c0_i32_0 = arith.constant 0 : i32
    %c0_i32_1 = arith.constant 0 : i32
    return %c0_i32, %c0_i32_0 : i32, i32
  }
  func.func @transform_5(%arg0: i32) -> (i32, i32) {
    %c0_i32 = arith.constant 0 : i32
    %c0_i32_0 = arith.constant 0 : i32
    %c0_i32_1 = arith.constant 0 : i32
    return %c0_i32, %c0_i32_0 : i32, i32
  }
  func.func @transform_6(%arg0: i32) -> (i32, i32) {
    %c0_i32 = arith.constant 0 : i32
    %c0_i32_0 = arith.constant 0 : i32
    %c0_i32_1 = arith.constant 0 : i32
    return %c0_i32, %c0_i32_0 : i32, i32
  }
  func.func @transform_7(%arg0: i32) -> (i32, i32) {
    %c0_i32 = arith.constant 0 : i32
    %c0_i32_0 = arith.constant 0 : i32
    %c0_i32_1 = arith.constant 0 : i32
    return %c0_i32, %c0_i32_0 : i32, i32
  }
  func.func @transform_8(%arg0: i32) -> (i32, i32) {
    %c0_i32 = arith.constant 0 : i32
    %c0_i32_0 = arith.constant 0 : i32
    %c0_i32_1 = arith.constant 0 : i32
    return %c0_i32, %c0_i32_0 : i32, i32
  }
  func.func @transform_9(%arg0: i32) -> (i32, i32) {
    %c0_i32 = arith.constant 0 : i32
    %c0_i32_0 = arith.constant 0 : i32
    return %arg0, %c0_i32 : i32, i32
  }
}

</mosaic_0001>

<bundles_post_ra>
// kernel: multimodal_forward.1
= control target key start
LH: loop header
LB: loop body
LE: loop exit
PB: predicated region body
PF: predicated region fallthrough
CT: control target
= control target key end

     0   :  { %v457_v3 = vmov 0   ;;  %v458_v4 = vmov 0.0|0.0   ;;  %vm459_vm0 = vmmov 0   ;;  %v460_v6 = vmov 0.0   ;;  %s575_s0 = inlined_call_operand.vmem [shape: s32[2,1], index: 0, kind: input, shape index: {}]   ;;  %s576_s1 = inlined_call_operand.vmem [shape: f32[2,8,32], index: 1, kind: input, shape index: {}]   ;;  %s577_s2 = inlined_call_operand.vmem [shape: f32[2,24], index: 2, kind: input, shape index: {}]   ;;  %s578_s3 = inlined_call_operand.vmem [shape: f32[1,32], index: 3, kind: input, shape index: {}]   ;;  %s579_s4 = inlined_call_operand.vmem [shape: f32[24,16], index: 4, kind: input, shape index: {}]   ;;  %s580_s5 = inlined_call_operand.vmem [shape: f32[1,16], index: 5, kind: input, shape index: {}]   ;;  %s581_s6 = inlined_call_operand.vmem [shape: f32[32,128], index: 6, kind: input, shape index: {}]   ;;  %s582_s7 = inlined_call_operand.vmem [shape: f32[16,128], index: 7, kind: input, shape index: {}]   ;;  %s583_s8 = inlined_call_operand.vmem [shape: f32[1,128], index: 8, kind: input, shape index: {}]   ;;  %s584_s9 = inlined_call_operand.hbm [shape: f32[2,128], index: 9, kind: output, shape index: {}]  }
   0x1   :  { %v33_v0 = vld [vmem:[%s575_s0] sm:$0x3]  ;;  %v99_v2 = vld [vmem:[%s579_s4 + $0x8] sm:$0xff]  ;;  %428 = vset.pattern.permute.xlu0 %v457_v3  ;;  %411 = vmatprep.subr.bf16.mxu0 %v458_v4 }
   0x2   :  { %v98_v1 = vld [vmem:[%s579_s4] sm:$0xff]  ;;  %37 = vperm.xlu0 %428, %v33_v0   ;;  %390 = vmatprep.mubr.msk.f32.mxu0 %vm459_vm0, %v460_v6 }
   0x3   :  { %v412_v5 = vpack.c.bf16 %v99_v2, %v98_v1 }
   0x4   :  { %14 = vsyncpa [#allocation3], 0  ;;  %417 = vmatprep.subr.bf16.mxu1 %v458_v4  ;;  %v100_v7 = vld [vmem:[%s579_s4 + $0x10] sm:$0xff]  ;;  %408 = vmatprep.mubr.msk.f32.mxu1 %vm459_vm0, %v460_v6  ;;  %v97_v8 = vld [vmem:[%s577_s2] sm:$0x3]  ;;  %vm108_vm1 = vcmask 195584   ;;  %v34_v9 = vlaneseq }
   0x5   :  { %413 = vmatpush3.bf16.msra.mxu0 %v412_v5  ;;  %vm42_vm2 = vcmask 58368   ;;  %v185_v19 = vld [vmem:[%s581_s6] sm:$0xff]  ;;  %v186_v20 = vld [vmem:[%s581_s6 + $0x8] sm:$0xff]  ;;  %v187_v24 = vld [vmem:[%s581_s6 + $0x10] sm:$0xff]  ;;  %vm191_vm4 = vcmask 130048   ;;  %vm65_vm5 = vcmask 261120  }
   0x6   :  { %388 = vmatprep.subr.mxu0 %v460_v6  ;;  %v50_v10 = vshrl.u32 %v34_v9, 7  ;;  %v35_v11 = vand.u32 127, %v34_v9  ;;  %v418_v21 = vpack.c.bf16 %v186_v20, %v185_v19  ;;  %v189_v22 = vld [vmem:[%s582_s7] sm:$0xff]  ;;  %v190_v23 = vld [vmem:[%s582_s7 + $0x8] sm:$0xff]  ;;  %v188_v26 = vld [vmem:[%s581_s6 + $0x18] sm:$0xff]  ;;  %vm268_vm6 = vcmask 1041409  }
   0x7   :  { %v415_v25 = vpack.c.bf16 %v190_v23, %v189_v22  ;;  %v421_v27 = vpack.c.bf16 %v188_v26, %v187_v24  ;;  %v367_v28 = vld [vmem:[%s580_s5] ss:$0 sm:$0xff]  ;;  %v48_v36 = vld [vmem:[%s576_s1 + $0x8] sm:$0xff]  ;;  %s461_s13 = smov [#allocation2]  }
   0x8   :  { %v58_v12 = vsub.s32 1, %v50_v10  ;;  %v51_v17 = vsub.s32 0, %v50_v10  ;;  %419 = vmatpush3.bf16.msra.mxu1 %v418_v21  ;;  %v47_v34 = vld [vmem:[%s576_s1] sm:$0xff]  ;;  %s357_s14 = sshll.u32 %s461_s13, 4  ;;  %s358_s14 = int_to_ptr.vmem [resolvable:$true] %s357_s14 }
   0x9   :  { %389 = vmatpush3.msra.mxu0 %v100_v7  ;;  %420 = vmatprep.subr.bf16.mxu1 %v458_v4  ;;  %v366_v59 = vld [vmem:[%s578_s3] ss:$0 sm:$0xff]  ;;  %s433_s3 = scalar_lea.vmem %s358_s14, 32  ;;  %p438_p1 = scmp.lt.s32.totalorder %s358_s14, %s358_s14 }
   0xa   :  { %391 = vmatmul.mubr.msk.f32.vlgmr.msra.gmra.mrb[0].mxu0 %vm108_vm1, %v97_v8  ;;  %414 = vmatprep.subr.bf16.mxu0 %v458_v4  ;;  %p434_p0 = scmp.ne.s32.totalorder %s358_s14, %s433_s3  ;;  %p439_p2 = scmp.lt.s32.totalorder %s433_s3, %s433_s3 }
   0xb   :  { %397 = vmatprep.mubr.msk.f32.mxu0 %vm459_vm0, %v460_v6  ;;  %416 = vmatpush3.bf16.msra.mxu0 %v415_v25 }
   0xc   :  { %422 = vmatpush3.bf16.msra.mxu1 %v421_v27  ;;  %p440_p3 = por %p439_p2, %p438_p1 }
   0xe   :  { %p441_p4 = pnand %p440_p3, %p434_p0 }
  0x81   :  { %v38_v13 = vpop.permute.xlu0 %37 }
  0x82   :  { %vm39_vm3 = vcmp.lt.s32.totalorder %v35_v11, %v38_v13 }
  0x83   :  { %v365_v14 = vsel %vm39_vm3, 1.0, %v460_v6  ;;  %v371_v6 = vld [vmem:[%s583_s8] ss:$0 sm:$0xff] }
  0x84   :  { %v43_v15 = vsel %vm42_vm2, %v365_v14, 0.0  ;;  %v59_v16 = vrot.slane %v365_v14, %v58_v12  ;;  %v52_v18 = vrot.slane %v365_v14, %v51_v17 }
  0x85   :  { %44 = vadd.xlane.f32.xlu0 %v43_v15 }
  0x86   :  { %61 = vbcast.lane.b32.xlu1 %v59_v16, 256 }
  0x8a   :  { %54 = vbcast.lane.b32.xlu1 %v52_v18, 256 }
  0xdd   :  { %v178_v29 = vpop.f32.mrb[0].mxu0 }
  0xde   :  { %v179_v30 = vadd.f32 %v367_v28, %v178_v29  ;;  %v392_v31 = vpop.f32.mrb[1].mxu0 }
  0xe0   :  { %v184_v32 = vmax.f32 %v179_v30, 0.0 }
  0xe2   :  { %398 = vmatmul.mubr.msk.f32.vlgmr.msra.gmra.mrb[2].mxu0 %vm191_vm4, %v184_v32 }
  0xf8   :  { %v62_v33 = vpop.permute.xlu1 %61 }
  0xf9   :  { %v64_v38 = vmul.f32 %v62_v33, %v48_v36 }
  0xfb   :  { %v73_v40 = vsel %vm65_vm5, %v64_v38, 0.0 }
  0xfc   :  { %v55_v35 = vpop.permute.xlu1 %54  ;;  %v74_v42 = vrot.slane %v73_v40, 4 }
  0xfd   :  { %v63_v37 = vmul.f32 %v55_v35, %v47_v34 }
  0xfe   :  { %v75_v44 = vadd.f32 %v74_v42, %v73_v40 }
  0xff   :  { %v66_v39 = vsel %vm65_vm5, %v63_v37, 0.0 }
 0x100   :  { %v67_v41 = vrot.slane %v66_v39, 4  ;;  %v76_v48 = vrot.slane %v75_v44, 2 }
 0x102   :  { %v68_v43 = vadd.f32 %v67_v41, %v66_v39  ;;  %v77_v51 = vadd.f32 %v76_v48, %v75_v44 }
 0x104   :  { %v69_v45 = vrot.slane %v68_v43, 2  ;;  %v78_v53 = vrot.slane %v77_v51, 1 }
 0x106   :  { %v70_v50 = vadd.f32 %v69_v45, %v68_v43  ;;  %v79_v56 = vadd.f32 %v78_v53, %v77_v51 }
 0x108   :  { %v71_v52 = vrot.slane %v70_v50, 1 }
 0x10a   :  { %v72_v54 = vadd.f32 %v71_v52, %v70_v50 }
 0x112   :  { %v45_v46 = vpop.xlane.xlu0 %44 }
 0x113   :  { %v46_v47 = vmax.f32 %v45_v46, 1.0 }
 0x115   :  { %v81_v49 = vrot.slane %v46_v47, 1  ;;  %429 = vrcp.f32 %v46_v47 }
 0x117   :  { %431 = vrcp.f32 %v81_v49 }
 0x11f   :  { %v430_v55 = vpop.eup %429 }
 0x120   :  { %v85_v57 = vmul.f32 %v430_v55, %v72_v54 }
 0x121   :  { %v432_v58 = vpop.eup %431 }
 0x122   :  { %v87_v60 = vmul.f32 %v432_v58, %v79_v56  ;;  %v95_v61 = vadd.f32 %v366_v59, %v85_v57 }
 0x124   :  { %v96_v62 = vadd.f32 %v366_v59, %v87_v60  ;;  %v182_v0 = vmax.f32 %v95_v61, 0.0 }
 0x126   :  { %v183_v63 = vmax.f32 %v96_v62, 0.0 }
 0x128   :  { %v267_v1 = vrot.slane %v183_v63, 7 }
 0x12a   :  { %v269_v2 = vsel %vm268_vm6, %v267_v1, %v182_v0 }
 0x12b   :  { %409 = vmatmul.mubr.msk.f32.vlgmr.msra.gmra.mrb[0].mxu1 %vm65_vm5, %v269_v2 }
 0x1b5   :  { %v261_v3 = vpop.f32.mrb[2].mxu0 }
 0x1b6   :  { %v399_v4 = vpop.f32.mrb[3].mxu0 }
 0x1fe   :  { %v338_v5 = vpop.f32.mrb[0].mxu1 }
 0x1ff   :  { %v339_v7 = vadd.f32 %v338_v5, %v261_v3  ;;  %v410_v8 = vpop.f32.mrb[1].mxu1 }
 0x201   :  { %v349_v9 = vadd.f32 %v371_v6, %v339_v7 }
 0x203   :  { %350 = vst [vmem:[#allocation2] sm:$0x3] %v349_v9 }
 0x204   :  { %444 = shalt.err (!%p441_p4)
}
 0x205   :  { %s445_s16 = scalar_lea.hbm %s584_s9, 32 }
 0x206   :  { %p446_p5 = scmp.ne.s32.totalorder %s584_s9, %s445_s16  ;;  %p449_p6 = scmp.lt.u32.totalorder %s445_s16, %s584_s9 }
 0x208   :  { %p451_p7 = pnand %p449_p6, %p446_p5 }
 0x20a   :  { %454 = shalt.err (!%p451_p7)
}
 0x20b   :  { %360 = dma.vmem_to_hbm [thread:$0]  %s358_s14, 32, %s584_s9, [#allocation3]  }
 0x20c   :  { %455 = dma.done.wait [#allocation3], 32  }
 0x20d   :  { %456 = vsyncadd [#allocation3], 4294967264 }
 0x20e   :  { %364 = vsyncpa [#allocation3], 1 }

</bundles_post_ra>
